<compile_context>
chip_gen: v7x
topology: tpu7x:2x2x1
jax: 0.10.0
libtpu: 0.0.40
codegen_flags: <defaults>
</compile_context>

<pallas_src>
import math
import jax
import jax.numpy as jnp
from jax.experimental import pallas as pl
from jax.experimental.pallas import tpu as pltpu


def _round_up(x: int, m: int) -> int:
    return (x + m - 1) // m * m


def _denoise_kernel(w_ref, x_ref, o_ref):
    # w_ref: (1, tile_m) std-dev prior row (resident, broadcast over sublanes)
    # x_ref: (tile_n, tile_m) measurement-variance tile
    w = w_ref[...].astype(jnp.float32)
    a = w * w                                   # sigma_prior^2
    x = x_ref[...].astype(jnp.float32)
    o_ref[...] = (a / (a + x)).astype(o_ref.dtype)


def denoise_layer(
    x: jax.Array,
    weight: jax.Array,
    *,
    tile_n: int | None = None,
    tile_m: int | None = None,
    vmem_budget_bytes: int = 24 << 20,   # fits v7x (64 MiB phys) with headroom
) -> jax.Array:
    """y = weight^2 / (weight^2 + x); weight shape (M,), x shape (*, M)."""
    orig_shape = x.shape
    M = orig_shape[-1]
    assert weight.shape == (M,), f"weight must be ({M},), got {weight.shape}"

    x2 = x.reshape(-1, M)
    N = x2.shape[0]
    out_dtype = x2.dtype
    itemsize = jnp.dtype(out_dtype).itemsize
    # sublane multiple: 8 for f32, 16 for bf16/f16, 32 for 8-bit dtypes
    sublane = max(8, 32 // itemsize)

    # ---- lane (feature) tiling: full M when modest, tile when very large ----
    M_pad = _round_up(M, 128)
    if tile_m is None:
        tile_m = M_pad if M_pad <= 16384 else 2048
    tile_m = min(_round_up(tile_m, 128), M_pad)
    M_pad = _round_up(M_pad, tile_m)

    # ---- sublane (batch) tiling sized against the VMEM budget ---------------
    # Live VMEM ~ 4 tiles of (tile_n, tile_m): x double-buffer + out double-buffer.
    if tile_n is None:
        bytes_per_row = 4 * tile_m * itemsize
        tile_n = max(sublane, vmem_budget_bytes // bytes_per_row)
        tile_n = min(tile_n, 4096)            # plenty to amortize ~0.35 us/step
    tile_n = _round_up(tile_n, sublane)
    tile_n = min(tile_n, _round_up(N, sublane))   # single block for small N
    N_pad = _round_up(N, tile_n)

    # ---- pad HBM-side so the grid tiles exactly; slice the result back ------
    if (N_pad, M_pad) != (N, M):
        x2 = jnp.pad(x2, ((0, N_pad - N), (0, M_pad - M)))
    w2d = weight.reshape(1, M)
    if M_pad != M:
        # pad prior with 1.0 -> padded gain is 1/(1+0): finite, sliced away
        w2d = jnp.pad(w2d, ((0, 0), (0, M_pad - M)), constant_values=1.0)

    grid = (N_pad // tile_n, M_pad // tile_m)

    # Explicit VMEM limit: needed buffers + headroom (v5e scoped default is
    # only 16 MiB; keep the cap well under v7x's 64 MiB physical).
    w_itemsize = jnp.dtype(w2d.dtype).itemsize
    needed = 4 * tile_n * tile_m * itemsize + 2 * tile_m * w_itemsize
    vmem_limit = int(min(max(needed + (4 << 20), 8 << 20), 48 << 20))

    out = pl.pallas_call(
        _denoise_kernel,
        out_shape=jax.ShapeDtypeStruct((N_pad, M_pad), out_dtype),
        grid_spec=pltpu.PrefetchScalarGridSpec(
            num_scalar_prefetch=0,
            grid=grid,
            in_specs=[
                pl.BlockSpec((1, tile_m), lambda i, j: (0, j)),       # weight row
                pl.BlockSpec((tile_n, tile_m), lambda i, j: (i, j)),  # x tile
            ],
            out_specs=pl.BlockSpec((tile_n, tile_m), lambda i, j: (i, j)),
        ),
        compiler_params=pltpu.CompilerParams(
            # no reduction axis -> both axes parallel (sharded across TCs on v7x)
            dimension_semantics=("parallel", "parallel"),
            vmem_limit_bytes=vmem_limit,
        ),
    )(w2d, x2)

    if (N_pad, M_pad) != (N, M):
        out = out[:N, :M]
    return out.reshape(orig_shape)


def _reference(x, weight):
    a = (weight.astype(jnp.float32)) ** 2
    a = a.reshape((1,) * (x.ndim - 1) + (-1,))
    return (a / (a + x.astype(jnp.float32))).astype(x.dtype)


if __name__ == "__main__":
    key = jax.random.PRNGKey(0)

    # Case 1: small (N, M) consistent with the module example.
    N, M = 16, 128
    k_w, k_x, k_w2, k_x2 = jax.random.split(key, 4)
    weight = jax.random.uniform(
        k_w, (M,), dtype=jnp.float32, minval=0.0, maxval=2.0 / math.sqrt(M)
    )
    x = jax.random.normal(k_x, (N, M), dtype=jnp.float32)
    y = jax.block_until_ready(denoise_layer(x, weight))
    assert y.shape == (N, M)
    assert jnp.allclose(y, _reference(x, weight), rtol=1e-6, atol=1e-6)

    # Case 2: arbitrary leading dims and non-128-aligned M (exercises padding).
    M2 = 30
    weight2 = jax.random.uniform(
        k_w2, (M2,), dtype=jnp.float32, minval=0.0, maxval=2.0 / math.sqrt(M2)
    )
    x2 = jax.random.normal(k_x2, (2, 3, M2), dtype=jnp.float32)
    y2 = jax.block_until_ready(denoise_layer(x2, weight2))
    assert y2.shape == (2, 3, M2)
    assert jnp.allclose(y2, _reference(x2, weight2), rtol=1e-6, atol=1e-6)

    print("KERNEL_OK")
</pallas_src>

<mosaic_0001>
module attributes {stable_mosaic.version = 11 : i64} {
  func.func @_denoise_kernel(%arg0: i32, %arg1: i32, %arg2: memref<1x128xf32, #tpu.memory_space<vmem>>, %arg3: memref<16x128xf32, #tpu.memory_space<vmem>>, %arg4: memref<16x128xf32, #tpu.memory_space<vmem>>) attributes {dimension_semantics = [#tpu.dimension_semantics<parallel>, #tpu.dimension_semantics<parallel>], iteration_bounds = array<i64: 1, 1>, scalar_prefetch = 0 : i64, scratch_operands = 0 : i64, tpu.core_type = #tpu.core_type<tc>, window_params = [{transform_indices = @transform_0, window_bounds = array<i64: 1, 128>}, {transform_indices = @transform_1, window_bounds = array<i64: 16, 128>}, {transform_indices = @transform_2, window_bounds = array<i64: 16, 128>}]} {
    %c0 = arith.constant 0 : index
    %c0_0 = arith.constant 0 : index
    %0 = vector.load %arg2[%c0, %c0_0] : memref<1x128xf32, #tpu.memory_space<vmem>>, vector<1x128xf32>
    %1 = arith.mulf %0, %0 : vector<1x128xf32>
    %c0_1 = arith.constant 0 : index
    %c0_2 = arith.constant 0 : index
    %2 = vector.load %arg3[%c0_1, %c0_2] : memref<16x128xf32, #tpu.memory_space<vmem>>, vector<16x128xf32>
    %3 = vector.broadcast %1 : vector<1x128xf32> to vector<16x128xf32>
    %4 = arith.addf %3, %2 : vector<16x128xf32>
    %5 = vector.broadcast %1 : vector<1x128xf32> to vector<16x128xf32>
    %6 = arith.divf %5, %4 : vector<16x128xf32>
    %c0_3 = arith.constant 0 : index
    %c0_4 = arith.constant 0 : index
    %7 = vector.load %arg4[%c0_3, %c0_4] : memref<16x128xf32, #tpu.memory_space<vmem>>, vector<16x128xf32>
    tpu.vector_store %arg4[%c0_3, %c0_4], %6 {strides = array<i32>} : memref<16x128xf32, #tpu.memory_space<vmem>>, vector<16x128xf32>,
    return
  }
  func.func @transform_0(%arg0: i32, %arg1: i32) -> (i32, i32) {
    %c0_i32 = arith.constant 0 : i32
    %c0_i32_0 = arith.constant 0 : i32
    return %c0_i32, %arg1 : i32, i32
  }
  func.func @transform_1(%arg0: i32, %arg1: i32) -> (i32, i32) {
    %c0_i32 = arith.constant 0 : i32
    return %arg0, %arg1 : i32, i32
  }
  func.func @transform_2(%arg0: i32, %arg1: i32) -> (i32, i32) {
    %c0_i32 = arith.constant 0 : i32
    return %arg0, %arg1 : i32, i32
  }
}

</mosaic_0001>

<bundles_post_ra>
// kernel: tpu_custom_call.1
= control target key start
LH: loop header
LB: loop body
LE: loop exit
PB: predicated region body
PF: predicated region fallthrough
CT: control target
= control target key end

     0   :  { %7 = vsyncpa [#allocation3], 0  ;;  %s224_s0 = inlined_call_operand.hbm [shape: f32[1,128], index: 0, kind: input, shape index: {}]   ;;  %s225_s1 = inlined_call_operand.hbm [shape: f32[16,128], index: 1, kind: input, shape index: {}]   ;;  %s226_s2 = inlined_call_operand.hbm [shape: f32[16,128], index: 2, kind: output, shape index: {}]  }
   0x1   :  { %8 = vsyncpa [#allocation6], 0 }
   0x2   :  { %9 = vsyncpa [#allocation4], 0  ;;  %s155_s9 = smov [#allocation2]   ;;  %s156_s11 = smov [#allocation5]  }
   0x3   :  { %s16_s10 = sshll.u32 %s155_s9, 4  ;;  %s25_s12 = sshll.u32 %s156_s11, 4  ;;  %s17_s10 = int_to_ptr.vmem [resolvable:$true] %s16_s10  ;;  %s175_s12 = int_to_ptr.vmem [resolvable:$true] %s25_s12 }
   0x4   :  { %s83_s15 = scalar_lea.hbm %s224_s0, 16 }
   0x5   :  { %p84_p0 = scmp.ne.s32.totalorder %s224_s0, %s83_s15  ;;  %p87_p1 = scmp.lt.u32.totalorder %s83_s15, %s224_s0 }
   0x7   :  { %p89_p2 = pnand %p87_p1, %p84_p0 }
   0x9   :  { %92 = shalt.err (!%p89_p2)
}
   0xa   :  { %s93_s20 = scalar_lea.vmem %s17_s10, 16  ;;  %s97_s21 = scalar_lea.vmem %s17_s10, 32 }
   0xb   :  { %p94_p3 = scmp.ne.s32.totalorder %s17_s10, %s93_s20  ;;  %p98_p4 = scmp.lt.s32.totalorder %s17_s10, %s17_s10 }
   0xc   :  { %p99_p5 = scmp.lt.s32.totalorder %s97_s21, %s93_s20 }
   0xe   :  { %p100_p6 = por %p99_p5, %p98_p4 }
  0x10   :  { %p101_p7 = pnand %p100_p6, %p94_p3 }
  0x12   :  { %104 = shalt.err (!%p101_p7)
}
  0x13   :  { %19 = dma.hbm_to_vmem [thread:$0]  %s224_s0, 16, %s17_s10, [#allocation3]  }
  0x14   :  { %s105_s26 = scalar_lea.hbm %s225_s1, 256 }
  0x15   :  { %p106_p8 = scmp.ne.s32.totalorder %s225_s1, %s105_s26  ;;  %p109_p9 = scmp.lt.u32.totalorder %s105_s26, %s225_s1 }
  0x17   :  { %p111_p10 = pnand %p109_p9, %p106_p8 }
  0x19   :  { %114 = shalt.err (!%p111_p10)
}
  0x1a   :  { %s115_s3 = scalar_lea.vmem %s175_s12, 256  ;;  %p120_p12 = scmp.lt.s32.totalorder %s175_s12, %s175_s12 }
  0x1b   :  { %p116_p11 = scmp.ne.s32.totalorder %s175_s12, %s115_s3  ;;  %p121_p13 = scmp.lt.s32.totalorder %s115_s3, %s115_s3 }
  0x1d   :  { %p122_p0 = por %p121_p13, %p120_p12 }
  0x1f   :  { %p123_p1 = pnand %p122_p0, %p116_p11 }
  0x21   :  { %126 = shalt.err (!%p123_p1)
}
  0x22   :  { %s157_s0 = smov 128   ;;  %s158_s4 = smov 8  }
  0x23   :  { %31 = dma.hbm_to_vmem [thread:$0]  %s225_s1, 256, %s175_s12, [#allocation6], %s157_s0, %s157_s0, %s158_s4  }
  0x24   :  { %149 = dma.done.wait [#allocation3], 16  }
  0x25   :  { %150 = vsyncadd [#allocation3], 4294967280 }
  0x26   :  { %151 = dma.done.wait [#allocation6], 256  }
  0x27   :  { %152 = vsyncadd [#allocation6], 4294967040  ;;  %v43_v0 = vlaneseq  ;;  %v38_v3 = vld [vmem:[#allocation2] sm:$0x1]  ;;  %v40_v5 = vld [vmem:[#allocation5] sm:$0xff]  ;;  %s159_s7 = smov [#allocation7]  }
  0x28   :  { %v39_v4 = vmul.f32 %v38_v3, %v38_v3  ;;  %v41_v6 = vld [vmem:[#allocation5 + $0x8] sm:$0xff]  ;;  %s61_s8 = sshll.u32 %s159_s7, 4  ;;  %s62_s8 = int_to_ptr.vmem [resolvable:$true] %s61_s8 }
  0x29   :  { %v44_v1 = vshrl.u32 %v43_v0, 7  ;;  %s127_s1 = scalar_lea.vmem %s62_s8, 256  ;;  %p132_p3 = scmp.lt.s32.totalorder %s62_s8, %s62_s8 }
  0x2a   :  { %p128_p2 = scmp.ne.s32.totalorder %s62_s8, %s127_s1  ;;  %p133_p4 = scmp.lt.s32.totalorder %s127_s1, %s127_s1 }
  0x2b   :  { %v45_v2 = vsub.s32 0, %v44_v1 }
  0x2c   :  { %p134_p5 = por %p133_p4, %p132_p3 }
  0x2d   :  { %v46_v7 = vrot.slane %v39_v4, %v45_v2 }
  0x2e   :  { %p135_p6 = pnand %p134_p5, %p128_p2 }
  0x2f   :  { %v48_v8 = vadd.f32 %v46_v7, %v40_v5  ;;  %v49_v9 = vadd.f32 %v46_v7, %v41_v6 }
  0x31   :  { %79 = vrcp.f32 %v48_v8 }
  0x32   :  { %81 = vrcp.f32 %v49_v9 }
  0x3b   :  { %v80_v10 = vpop.eup %79 }
  0x3c   :  { %v82_v11 = vpop.eup %81  ;;  %v51_v12 = vmul.f32 %v80_v10, %v46_v7 }
  0x3d   :  { %v53_v13 = vmul.f32 %v82_v11, %v46_v7 }
  0x3e   :  { %54 = vst [vmem:[#allocation7] sm:$0xff] %v51_v12 }
  0x3f   :  { %55 = vst [vmem:[#allocation7 + $0x8] sm:$0xff] %v53_v13 }
  0x40   :  { %138 = shalt.err (!%p135_p6)
}
  0x41   :  { %s139_s11 = scalar_lea.hbm %s226_s2, 256 }
  0x42   :  { %p140_p7 = scmp.ne.s32.totalorder %s226_s2, %s139_s11  ;;  %p143_p8 = scmp.lt.u32.totalorder %s139_s11, %s226_s2 }
  0x44   :  { %p145_p9 = pnand %p143_p8, %p140_p7 }
  0x46   :  { %148 = shalt.err (!%p145_p9)
}
  0x47   :  { %67 = dma.vmem_to_hbm [thread:$0]  %s62_s8, 256, %s226_s2, [#allocation4], %s157_s0, %s157_s0, %s158_s4  }
  0x48   :  { %153 = dma.done.wait [#allocation4], 256  }
  0x49   :  { %154 = vsyncadd [#allocation4], 4294967040 }
  0x4a   :  { %71 = vsyncpa [#allocation3], 1 }
  0x4b   :  { %72 = vsyncpa [#allocation6], 1 }
  0x4c   :  { %73 = vsyncpa [#allocation4], 1 }

</bundles_post_ra>
